<compile_context>
chip_gen: v5e
topology: v5e:2x2
jax: 0.10.0
libtpu: 0.0.40
codegen_flags: <defaults>
</compile_context>

<pallas_src>
import functools

import jax
import jax.numpy as jnp
from jax.experimental import pallas as pl
from jax.experimental.pallas import tpu as pltpu


# ----------------------------- tiling helpers ------------------------------

def _round_up(x, m):
    return -(-x // m) * m


def _sublane(itemsize):
    # native sublane packing: 8 rows for 4-byte, 16 for 2-byte, 32 for 1-byte dtypes
    return max(8, 32 // max(1, itemsize))


def _pick_block_budget():
    """~4 MiB per block buffer (v6e/v7x); 2 MiB on v5e (slower HBM, small default
    scoped VMEM => bigger blocks buy nothing there).  Detection is best-effort."""
    kind = ""
    try:
        info = pltpu.get_tpu_info()
        kind += " ".join(str(getattr(info, a, "")) for a in ("chip_version", "version", "name"))
    except Exception:
        pass
    try:
        kind += " " + jax.devices()[0].device_kind
    except Exception:
        pass
    kind = kind.lower()
    if ("v5 lite" in kind) or ("v5e" in kind) or ("v5lite" in kind):
        return 2 << 20
    return 4 << 20


_BLOCK_BUDGET = _pick_block_budget()
_VMEM_LIMIT = 32 << 20      # explicit scoped-VMEM limit: 2x(in+out) double buffers fit on all gens
_SMALL_LAST_DIM = 64        # below this, last-axis reduces use the lane-dense transposed view


def _compiler_params(*semantics):
    return pltpu.CompilerParams(dimension_semantics=semantics,
                                vmem_limit_bytes=_VMEM_LIMIT)


def _choose_tm(rows, bytes_per_row, itemsize):
    """Row tile: as big as the VMEM budget allows, multiple of the sublane packing."""
    sub = _sublane(itemsize)
    if rows <= sub:
        return rows                                   # equals full dim -> allowed by the (8,128) rule
    tm = max(sub, _BLOCK_BUDGET // max(1, bytes_per_row))
    tm = min(tm, _round_up(rows, sub))
    return max(sub, (tm // sub) * sub)


def _pick_lanes(n):
    """Largest lane-dense last dim that divides n exactly (else None -> small tail pad)."""
    for lanes in (1024, 512, 256, 128):
        if n % lanes == 0:
            return lanes
    return None


# ----------------------------- in-kernel helpers ---------------------------

def _native_or_f32(x):
    # bf16 stays native (v6e/v7x bf16 VPU/EUP; v5e legalizes internally); others -> f32.
    if x.dtype == jnp.float32 or x.dtype == jnp.bfloat16:
        return x
    return x.astype(jnp.float32)


def _fast_div(num, den):
    # EUP approximate reciprocal + one Newton step (~1e-7 rel err) instead of the
    # multi-op VALU divide sequence; rides the otherwise-idle EUP slot.
    r = pl.reciprocal(den, approx=True)
    r = r * (2.0 - den * r)
    return num * r


# ----------------------------- Pallas kernels ------------------------------

def _sigmoid_kernel(x_ref, o_ref):
    # sigmoid(x) = 0.5 * tanh(0.5 x) + 0.5 : EUP tanh, no VALU divide, ~1 ulp accurate.
    x = _native_or_f32(x_ref[...])
    o_ref[...] = (0.5 * jnp.tanh(0.5 * x) + 0.5).astype(o_ref.dtype)


def _tanh_kernel(x_ref, o_ref):
    o_ref[...] = jnp.tanh(_native_or_f32(x_ref[...])).astype(o_ref.dtype)


# ---- last-axis (lane) reductions: rows on sublanes, wide reduce dim on lanes ----

def _softmax_last_kernel(x_ref, o_ref):
    x = x_ref[...].astype(jnp.float32)
    m = jnp.max(x, axis=-1, keepdims=True)
    e = jnp.exp(x - m)
    s = jnp.sum(e, axis=-1, keepdims=True)
    o_ref[...] = _fast_div(e, s).astype(o_ref.dtype)


def _logsoftmax_last_kernel(x_ref, o_ref):
    x = x_ref[...].astype(jnp.float32)
    m = jnp.max(x, axis=-1, keepdims=True)
    z = x - m
    lse = jnp.log(jnp.sum(jnp.exp(z), axis=-1, keepdims=True))
    o_ref[...] = (z - lse).astype(o_ref.dtype)


def _argmax_last_kernel(x_ref, o_ref):
    x = x_ref[...]
    c = x.shape[-1]
    m = jnp.max(x, axis=-1, keepdims=True)
    hit = x == m
    if jnp.issubdtype(x_ref.dtype, jnp.floating):
        hit = hit | jnp.isnan(x)          # NaN rows -> first NaN index (torch: NaN is max)
    idx = jax.lax.broadcasted_iota(jnp.int32, x.shape, dimension=x.ndim - 1)
    cand = jnp.where(hit, idx, jnp.int32(c))
    o_ref[...] = jnp.min(cand, axis=-1, keepdims=True)


# ---- sublane reductions: block (tb, C, tl), reduce over C, trailing axis lane-dense ----

def _softmax_mid_kernel(x_ref, o_ref):
    x = x_ref[...].astype(jnp.float32)            # (tb, C, tl)
    m = jnp.max(x, axis=1, keepdims=True)
    e = jnp.exp(x - m)
    s = jnp.sum(e, axis=1, keepdims=True)
    o_ref[...] = _fast_div(e, s).astype(o_ref.dtype)


def _logsoftmax_mid_kernel(x_ref, o_ref):
    x = x_ref[...].astype(jnp.float32)            # (tb, C, tl)
    m = jnp.max(x, axis=1, keepdims=True)
    z = x - m
    lse = jnp.log(jnp.sum(jnp.exp(z), axis=1, keepdims=True))
    o_ref[...] = (z - lse).astype(o_ref.dtype)


def _argmax_mid_kernel(x_ref, o_ref):
    x = x_ref[...]                                # (tb, C, tl)
    c = x.shape[1]
    m = jnp.max(x, axis=1, keepdims=True)
    hit = x == m
    if jnp.issubdtype(x_ref.dtype, jnp.floating):
        hit = hit | jnp.isnan(x)
    idx = jax.lax.broadcasted_iota(jnp.int32, x.shape, dimension=1)
    cand = jnp.where(hit, idx, jnp.int32(c))
    o_ref[...] = jnp.min(cand, axis=1)            # (tb, tl) lane-dense output


# ---- global argmax, stage 1: per-block (max, argmax), fully parallel grid ----

def _blockwise_argmax_kernel(x_ref, max_ref, idx_ref, *, total_n):
    i = pl.program_id(0)
    tm, lanes = x_ref.shape
    x = x_ref[...]
    is_float = jnp.issubdtype(x_ref.dtype, jnp.floating)
    # TODO(synk): int32 flat indices overflow for arrays with >= 2**31 elements.
    idx = (i * (tm * lanes)
           + jax.lax.broadcasted_iota(jnp.int32, (tm, lanes), 0) * lanes
           + jax.lax.broadcasted_iota(jnp.int32, (tm, lanes), 1))
    valid = idx < total_n                          # masks ragged block + flat tail pad
    if is_float:
        neg = jnp.asarray(-jnp.inf, x_ref.dtype)
    else:
        neg = jnp.asarray(jnp.iinfo(x_ref.dtype).min, x_ref.dtype)
    xv = jnp.where(valid, x, neg)                  # native dtype compare (no f32 upcast)
    m = jnp.max(xv, axis=(0, 1), keepdims=True)    # NaN-propagating
    hit = (xv == m)
    if is_float:
        hit = hit | (jnp.isnan(xv) & valid)        # NaN counts as the max (torch semantics)
    hit = hit & valid
    cand = jnp.where(hit, idx, jnp.int32(2**31 - 1))
    bi = jnp.min(cand, axis=(0, 1), keepdims=True)
    max_ref[...] = jnp.broadcast_to(m.reshape(1, 1, 1), max_ref.shape).astype(max_ref.dtype)
    idx_ref[...] = jnp.broadcast_to(bi.reshape(1, 1, 1), idx_ref.shape)


# ----------------------------- pallas_call glue ----------------------------

def _eltwise_call(kernel, x):
    """Elementwise kernel over a large lane-dense 2D slab (no pad unless size is ragged)."""
    n = int(x.size)
    if n == 0:
        return x
    flat = x.reshape(-1)
    lanes = _pick_lanes(n)
    padded = False
    if lanes is None:                               # ragged total size: single small tail pad
        lanes = 128
        flat = jnp.pad(flat, (0, _round_up(n, lanes) - n))
        padded = True
    rows = flat.size // lanes
    tm = _choose_tm(rows, lanes * x.dtype.itemsize, x.dtype.itemsize)
    x2d = flat.reshape(rows, lanes)
    out = pl.pallas_call(
        kernel,
        out_shape=jax.ShapeDtypeStruct((rows, lanes), x.dtype),
        grid=(pl.cdiv(rows, tm),),
        in_specs=[pl.BlockSpec((tm, lanes), lambda i: (i, 0))],
        out_specs=pl.BlockSpec((tm, lanes), lambda i: (i, 0)),
        compiler_params=_compiler_params("parallel"),
    )(x2d)
    if padded:
        return out.reshape(-1)[:n].reshape(x.shape)
    return out.reshape(x.shape)


def _rowwise_call(kernel, x2d, out_cols, out_dtype):
    """Last-axis-reducing kernel over rows of a 2D array (used for wide reduce dims)."""
    r, c = x2d.shape
    itemsize = x2d.dtype.itemsize
    # TODO(synk): very large reduce dims (tm*roundup(c,128)*itemsize beyond scoped VMEM)
    # would need a two-pass blocked reduction; not implemented.
    tm = _choose_tm(r, _round_up(c, 128) * itemsize, itemsize)
    return pl.pallas_call(
        kernel,
        out_shape=jax.ShapeDtypeStruct((r, out_cols), out_dtype),
        grid=(pl.cdiv(r, tm),),
        in_specs=[pl.BlockSpec((tm, c), lambda i: (i, 0))],
        out_specs=pl.BlockSpec((tm, out_cols), lambda i: (i, 0)),
        compiler_params=_compiler_params("parallel"),
    )(x2d)


def _reduce_mid_call(kernel, x, dim, out_has_c, out_dtype):
    """Reduce over axis `dim` (not last), trailing axes lane-dense.

    Collapses x to (B, C, L); grid (cdiv(B, tb), cdiv(L, tl)); each block is
    (tb, C, tl) and the kernel reduces over C.  No wrapper pads/slices: Pallas
    masks ragged boundary blocks.
    """
    shape = x.shape
    B = 1
    for s in shape[:dim]:
        B *= s
    C = shape[dim]
    L = 1
    for s in shape[dim + 1:]:
        L *= s
    x3 = x.reshape(B, C, L)

    itemsize = x.dtype.itemsize
    sub = _sublane(itemsize)
    c_pad = _round_up(C, sub)                       # sublane-padded channel footprint
    gran = 1 if out_has_c else 8                    # 2-D (tb, tl) out blocks need tb % 8 or tb == B
    tb_min = min(B, gran)
    if L <= 128:
        tl, tl_pad = L, 128
    else:
        tl = (_BLOCK_BUDGET // max(1, tb_min * c_pad * itemsize)) // 128 * 128
        tl = max(128, min(tl, _round_up(L, 128)))
        tl_pad = tl
    tb = _BLOCK_BUDGET // max(1, c_pad * tl_pad * itemsize)
    if tb >= B:
        tb = B
    else:
        tb = max(tb_min, (tb // gran) * gran)

    grid = (pl.cdiv(B, tb), pl.cdiv(L, tl))
    in_spec = pl.BlockSpec((tb, C, tl), lambda b, l: (b, 0, l))
    if out_has_c:
        out_shape = jax.ShapeDtypeStruct((B, C, L), out_dtype)
        out_spec = pl.BlockSpec((tb, C, tl), lambda b, l: (b, 0, l))
    else:
        out_shape = jax.ShapeDtypeStruct((B, L), out_dtype)
        out_spec = pl.BlockSpec((tb, tl), lambda b, l: (b, l))

    out = pl.pallas_call(
        kernel,
        out_shape=out_shape,
        grid=grid,
        in_specs=[in_spec],
        out_specs=out_spec,
        compiler_params=_compiler_params("parallel", "parallel"),
    )(x3)

    if out_has_c:
        return out.reshape(shape)
    return out.reshape(shape[:dim] + shape[dim + 1:])


def _global_argmax_call(x):
    """argmax(dim=None): parallel stage-1 per-block (max, argmax), tiny jnp stage-2."""
    n = int(x.size)
    flat = x.reshape(-1)
    lanes = _pick_lanes(n)
    if lanes is None:
        lanes = 128
        flat = jnp.pad(flat, (0, _round_up(n, lanes) - n))  # pad value irrelevant: masked by idx<n
    rows = flat.size // lanes
    tm = _choose_tm(rows, lanes * x.dtype.itemsize, x.dtype.itemsize)
    g = pl.cdiv(rows, tm)
    x2d = flat.reshape(rows, lanes)

    bmax, bidx = pl.pallas_call(
        functools.partial(_blockwise_argmax_kernel, total_n=n),
        out_shape=(jax.ShapeDtypeStruct((g, 1, 128), x.dtype),
                   jax.ShapeDtypeStruct((g, 1, 128), jnp.int32)),
        grid=(g,),
        in_specs=[pl.BlockSpec((tm, lanes), lambda i: (i, 0))],
        out_specs=(pl.BlockSpec((1, 1, 128), lambda i: (i, 0, 0)),
                   pl.BlockSpec((1, 1, 128), lambda i: (i, 0, 0))),
        compiler_params=_compiler_params("parallel"),
    )(x2d)

    bmax = bmax[:, 0, 0]
    bidx = bidx[:, 0, 0]
    if jnp.issubdtype(x.dtype, jnp.floating):
        nanflag = jnp.isnan(bmax)
        finite = jnp.where(nanflag, jnp.asarray(-jnp.inf, bmax.dtype), bmax)
        best = jnp.where(jnp.any(nanflag), jnp.argmax(nanflag), jnp.argmax(finite))
    else:
        best = jnp.argmax(bmax)
    # TODO(synk): torch.argmax returns int64; with x64 disabled this is int32.
    return bidx[best]


# ----------------------------- dispatch helpers -----------------------------

def _softmax(x, dim, log=False):
    dim = dim % x.ndim
    mid_kern = _logsoftmax_mid_kernel if log else _softmax_mid_kernel
    last_kern = _logsoftmax_last_kernel if log else _softmax_last_kernel
    if dim != x.ndim - 1:
        return _reduce_mid_call(mid_kern, x, dim, out_has_c=True, out_dtype=x.dtype)
    c = x.shape[-1]
    rest = x.size // max(1, c)
    if c < _SMALL_LAST_DIM and x.ndim >= 2 and rest >= 128:
        # lane-dense route for small trailing reduce dims: reduce dim on sublanes,
        # everything else on lanes (costs one transpose each way, saves 128/c x EUP work).
        xt = jnp.moveaxis(x, -1, 0)
        out = _reduce_mid_call(mid_kern, xt, 0, out_has_c=True, out_dtype=x.dtype)
        return jnp.moveaxis(out, 0, -1)
    out = _rowwise_call(last_kern, x.reshape(-1, c), c, x.dtype)
    return out.reshape(x.shape)


def _argmax(x, dim):
    if dim is None:
        return _global_argmax_call(x)
    dim = dim % x.ndim
    if dim != x.ndim - 1:
        return _reduce_mid_call(_argmax_mid_kernel, x, dim, out_has_c=False, out_dtype=jnp.int32)
    c = x.shape[-1]
    rest = x.size // max(1, c)
    if c < _SMALL_LAST_DIM and x.ndim >= 2 and rest >= 128:
        # transposed view: lane-dense compute AND lane-dense index stores.
        xt = jnp.moveaxis(x, -1, 0)
        return _reduce_mid_call(_argmax_mid_kernel, xt, 0, out_has_c=False, out_dtype=jnp.int32)
    out = _rowwise_call(_argmax_last_kernel, x.reshape(-1, c), 1, jnp.int32)
    return out.reshape(x.shape[:-1])


# ----------------------------- module ports ---------------------------------

class ArgMax:
    def __init__(self, dim=None):
        self.dim = dim

    def __call__(self, x):
        return _argmax(x, self.dim)


class Activation:
    def __init__(self, name, **params):
        if name is None or name == 'identity':
            # identity is a pure pass-through: no copy kernel, no HBM traffic.
            self.activation = lambda x: x
        elif name == 'sigmoid':
            self.activation = lambda x: _eltwise_call(_sigmoid_kernel, x)
        elif name == 'softmax2d':
            self.activation = lambda x: _softmax(x, 1)
        elif name == 'softmax':
            # TODO(synk): torch nn.Softmax(dim=None) legacy axis inference not reproduced; default dim=-1.
            dim = params.get('dim', -1)
            dim = -1 if dim is None else dim
            self.activation = lambda x: _softmax(x, dim)
        elif name == 'logsoftmax':
            dim = params.get('dim', -1)
            dim = -1 if dim is None else dim
            self.activation = lambda x: _softmax(x, dim, log=True)
        elif name == 'tanh':
            self.activation = lambda x: _eltwise_call(_tanh_kernel, x)
        elif name == 'argmax':
            self.activation = ArgMax(**params)
        elif name == 'argmax2d':
            self.activation = ArgMax(dim=1, **params)
        elif callable(name):
            self.activation = name(**params)
        else:
            raise ValueError(
                'Activation should be callable/sigmoid/softmax/logsoftmax/tanh/None; got {}'.format(name))

    def __call__(self, x):
        return self.activation(x)


# ----------------------------- demo / check ---------------------------------

if __name__ == "__main__":
    key = jax.random.PRNGKey(0)
    k1, k2 = jax.random.split(key)
    x = jax.random.normal(k1, (2, 4, 16, 16), dtype=jnp.float32)   # NCHW
    xw = jax.random.normal(k2, (8, 256), dtype=jnp.float32)        # wide trailing dim

    checks = []

    checks.append(bool(jnp.allclose(Activation('identity')(x), x)))
    checks.append(bool(jnp.allclose(Activation('sigmoid')(x), jax.nn.sigmoid(x), atol=1e-5)))
    checks.append(bool(jnp.allclose(Activation('tanh')(x), jnp.tanh(x), atol=1e-5)))

    y = Activation('softmax2d')(x)
    checks.append(y.shape == x.shape and bool(jnp.allclose(y, jax.nn.softmax(x, axis=1), atol=1e-5)))
    checks.append(bool(jnp.allclose(Activation('softmax', dim=-1)(x),
                                    jax.nn.softmax(x, axis=-1), atol=1e-5)))
    checks.append(bool(jnp.allclose(Activation('softmax', dim=-1)(xw),
                                    jax.nn.softmax(xw, axis=-1), atol=1e-5)))
    checks.append(bool(jnp.allclose(Activation('logsoftmax', dim=1)(x),
                                    jax.nn.log_softmax(x, axis=1), atol=1e-5)))

    y = Activation('argmax2d')(x)
    checks.append(y.shape == (2, 16, 16) and bool(jnp.array_equal(y, jnp.argmax(x, axis=1))))
    checks.append(bool(jnp.array_equal(Activation('argmax', dim=-1)(x), jnp.argmax(x, axis=-1))))
    checks.append(bool(jnp.array_equal(Activation('argmax', dim=-1)(xw), jnp.argmax(xw, axis=-1))))

    y = Activation('argmax')(x)
    checks.append(y.shape == () and bool(jnp.array_equal(y, jnp.argmax(x))))

    # bf16-native elementwise path (v6e/v7x compute in bf16; v5e legalizes internally)
    xb = x.astype(jnp.bfloat16)
    checks.append(bool(jnp.allclose(Activation('sigmoid')(xb).astype(jnp.float32),
                                    jax.nn.sigmoid(x), atol=1e-2)))

    jax.block_until_ready(y)
    assert all(checks), "Pallas result mismatch vs pure-JAX reference"
    print("KERNEL_OK")
</pallas_src>

<mosaic_0001>
module attributes {stable_mosaic.version = 11 : i64} {
  func.func @_sigmoid_kernel(%arg0: i32, %arg1: memref<2x1024xf32, #tpu.memory_space<vmem>>, %arg2: memref<2x1024xf32, #tpu.memory_space<vmem>>) attributes {dimension_semantics = [#tpu.dimension_semantics<parallel>], iteration_bounds = array<i64: 1>, scalar_prefetch = 0 : i64, scratch_operands = 0 : i64, tpu.core_type = #tpu.core_type<tc>, window_params = [{transform_indices = @transform_0, window_bounds = array<i64: 2, 1024>}, {transform_indices = @transform_1, window_bounds = array<i64: 2, 1024>}]} {
    %c0 = arith.constant 0 : index
    %c0_0 = arith.constant 0 : index
    %0 = vector.load %arg1[%c0, %c0_0] : memref<2x1024xf32, #tpu.memory_space<vmem>>, vector<2x1024xf32>
    %cst = arith.constant 5.000000e-01 : f32
    %1 = vector.broadcast %cst : f32 to vector<2x1024xf32>
    %2 = arith.mulf %1, %0 : vector<2x1024xf32>
    %3 = math.tanh %2 : vector<2x1024xf32>
    %cst_1 = arith.constant 5.000000e-01 : f32
    %4 = vector.broadcast %cst_1 : f32 to vector<2x1024xf32>
    %5 = arith.mulf %4, %3 : vector<2x1024xf32>
    %cst_2 = arith.constant 5.000000e-01 : f32
    %6 = vector.broadcast %cst_2 : f32 to vector<2x1024xf32>
    %7 = arith.addf %5, %6 : vector<2x1024xf32>
    %c0_3 = arith.constant 0 : index
    %c0_4 = arith.constant 0 : index
    %8 = vector.load %arg2[%c0_3, %c0_4] : memref<2x1024xf32, #tpu.memory_space<vmem>>, vector<2x1024xf32>
    tpu.vector_store %arg2[%c0_3, %c0_4], %7 {strides = array<i32>} : memref<2x1024xf32, #tpu.memory_space<vmem>>, vector<2x1024xf32>,
    return
  }
  func.func @transform_0(%arg0: i32) -> (i32, i32) {
    %c0_i32 = arith.constant 0 : i32
    %c0_i32_0 = arith.constant 0 : i32
    return %arg0, %c0_i32 : i32, i32
  }
  func.func @transform_1(%arg0: i32) -> (i32, i32) {
    %c0_i32 = arith.constant 0 : i32
    %c0_i32_0 = arith.constant 0 : i32
    return %arg0, %c0_i32 : i32, i32
  }
}

</mosaic_0001>

<bundles_post_ra>
// kernel: tpu_custom_call.1
= control target key start
LH: loop header
LB: loop body
LE: loop exit
PB: predicated region body
PF: predicated region fallthrough
CT: control target
= control target key end

     0   :  { %6 = vsyncpa [#allocation3], 0  ;;  %s128_s0 = inlined_call_operand.hbm [shape: f32[2,1024], index: 0, kind: input, shape index: {}]   ;;  %s129_s1 = inlined_call_operand.hbm [shape: f32[2,1024], index: 1, kind: output, shape index: {}]  }
   0x1   :  { %7 = vsyncpa [#allocation4], 0  ;;  %s13_s8 = sshll.u32 %s128_s0, 4  ;;  %s110_s9 = smov [#allocation2]   ;;  %s14_s8 = int_to_ptr.hbm [resolvable:$true] %s13_s8 }
   0x2   :  { %s15_s10 = sshll.u32 %s110_s9, 4  ;;  %s16_s10 = int_to_ptr.vmem [resolvable:$true] %s15_s10 }
   0x3   :  { %18 = dma.hbm_to_vmem [thread:$0]  %s14_s8, 256, %s16_s10, [#allocation3]  }
   0x4   :  { %106 = dma.done.wait [#allocation3], 256  }
   0x5   :  { %107 = vsyncadd [#allocation3], 4294967040  ;;  %v23_v0 = vld [vmem:[#allocation2] sm:$0xff]  ;;  %v24_v1 = vld [vmem:[#allocation2 + $0x8] sm:$0xff]  ;;  %s111_s11 = smov [#allocation5]   ;;  %s42_s14 = sshll.u32 %s129_s1, 4  ;;  %s43_s14 = int_to_ptr.hbm [resolvable:$true] %s42_s14 }
   0x6   :  { %v25_v2 = vmul.f32 0.5, %v23_v0  ;;  %v26_v3 = vmul.f32 0.5, %v24_v1  ;;  %s40_s12 = sshll.u32 %s111_s11, 4  ;;  %s41_s12 = int_to_ptr.vmem [resolvable:$true] %s40_s12 }
   0x8   :  { %54 = vtanh.f32 %v25_v2 }
   0x9   :  { %56 = vtanh.f32 %v26_v3 }
   0xe   :  { %v55_v4 = vpop.eup %54 }
   0xf   :  { %v57_v5 = vpop.eup %56  ;;  %v29_v6 = vmul.f32 0.5, %v55_v4 }
  0x10   :  { %v30_v7 = vmul.f32 0.5, %v57_v5 }
  0x11   :  { %v31_v8 = vadd.f32 0.5, %v29_v6 }
  0x12   :  { %v32_v9 = vadd.f32 0.5, %v30_v7 }
  0x13   :  { %33 = vst [vmem:[#allocation5] sm:$0xff] %v31_v8 }
  0x14   :  { %34 = vst [vmem:[#allocation5 + $0x8] sm:$0xff] %v32_v9 }
  0x15   :  { %45 = dma.vmem_to_hbm [thread:$0]  %s41_s12, 256, %s43_s14, [#allocation4]  }
  0x16   :  { %108 = dma.done.wait [#allocation4], 256  }
  0x17   :  { %109 = vsyncadd [#allocation4], 4294967040 }
  0x18   :  { %50 = vsyncpa [#allocation3], 1 }
  0x19   :  { %51 = vsyncpa [#allocation4], 1 }

</bundles_post_ra>
